<compile_context>
chip_gen: v5e
topology: v5e:2x2
jax: 0.10.0
libtpu: 0.0.40
codegen_flags: <defaults>
</compile_context>

<pallas_src>
import math

import jax
import jax.numpy as jnp
import numpy as np
from jax.experimental import pallas as pl
from jax.experimental.pallas import tpu as pltpu

# ----- model config (small, consistent with the module) -----
VOCAB = 50
HIDDEN = 32            # H
HEADS = 4              # attention heads
D_K = HIDDEN // HEADS  # 8
FF = HIDDEN * 4        # 128
SEQ = 8                # S
BATCH = 2              # B
N_TOK = BATCH * SEQ    # 16  (batch folded into rows inside the kernel)
NEG_INF = -1e9
VEC_W = 128            # packed-parameter row width (one lane tile)

assert 3 * HIDDEN <= VEC_W and FF <= VEC_W


# ---------------- Pallas encoder-layer kernel (single invocation, no grid) ----------------
def encoder_kernel(x_ref, bias_ref, hmask_ref, bsum_ref,
                   wqkv_ref, wo_ref, w1_ref, w2_ref, vec_ref, out_ref):
    f32 = jnp.float32
    x = x_ref[...]          # (N, H)      N = B*S
    bias = bias_ref[...]    # (N, HEADS*N) additive mask: 0 or -1e9 (padding + cross-batch)
    hmask = hmask_ref[...]  # (HEADS*N, H) 1.0 where channel belongs to the row's head
    bsum = bsum_ref[...]    # (HEADS*N, HEADS*N) 1.0 within the same per-head key block

    # packed small parameters: one (8, 128) tile, one DMA
    bqkv = vec_ref[0:1, 0:3 * HIDDEN]   # (1, 3H)
    bo = vec_ref[1:2, 0:HIDDEN]
    ln1_g = vec_ref[2:3, 0:HIDDEN]
    ln1_b = vec_ref[3:4, 0:HIDDEN]
    ln2_g = vec_ref[4:5, 0:HIDDEN]
    ln2_b = vec_ref[5:6, 0:HIDDEN]
    b1 = vec_ref[6:7, 0:FF]
    b2 = vec_ref[7:8, 0:HIDDEN]

    def layer_norm(v, g, b, eps=1e-6):
        mu = jnp.mean(v, axis=-1, keepdims=True)
        c = v - mu
        var = jnp.mean(c * c, axis=-1, keepdims=True)
        return g * c * jax.lax.rsqrt(var + eps) + b

    def gelu(v):
        # tanh approximation (BERT GELU)
        return 0.5 * v * (1.0 + jnp.tanh(0.7978845608028654 * (v + 0.044715 * v * v * v)))

    # ---- self-attention sublayer (pre-LN + residual), all heads in one contraction ----
    xn = layer_norm(x, ln1_g, ln1_b)
    qkv = jnp.dot(xn, wqkv_ref[...], preferred_element_type=f32) + bqkv   # (N, 3H)
    q = qkv[:, 0:HIDDEN]
    k = qkv[:, HIDDEN:2 * HIDDEN]
    v = qkv[:, 2 * HIDDEN:3 * HIDDEN]

    # head-expanded K / V: row (h*N + t) holds token t with only head h's channels kept.
    k_exp = jnp.concatenate([k] * HEADS, axis=0) * hmask    # (HEADS*N, H)
    v_exp = jnp.concatenate([v] * HEADS, axis=0) * hmask    # (HEADS*N, H)

    scale = 1.0 / math.sqrt(D_K)
    # s[q, h*N + t] = <q_head_h(q), k_head_h(t)>   -- one MXU contraction for every head
    s = jax.lax.dot_general(q, k_exp, (((1,), (1,)), ((), ())),
                            preferred_element_type=f32) * scale + bias    # (N, HEADS*N)

    # softmax per (query, head) block. The per-row max upper-bounds every block max,
    # and softmax is shift-invariant, so subtracting it is exact and avoids overflow.
    m = jnp.max(s, axis=-1, keepdims=True)
    e = jnp.exp(s - m)
    denom = jnp.dot(e, bsum, preferred_element_type=f32)    # per-block sums, broadcast in-block
    p = e * pl.reciprocal(denom, approx=True)               # EUP vrcp — effectively free

    # ctx[q, c] = sum_t p[q, head(c)*N + t] * v[t, c]  (head selection baked into v_exp),
    # heads land directly in their natural channel positions — no concat needed.
    ctx = jnp.dot(p, v_exp, preferred_element_type=f32)     # (N, H)

    attn = jnp.dot(ctx, wo_ref[...], preferred_element_type=f32) + bo
    x1 = x + attn

    # ---- feed-forward sublayer (pre-LN + residual) ----
    xn2 = layer_norm(x1, ln2_g, ln2_b)
    h1 = gelu(jnp.dot(xn2, w1_ref[...], preferred_element_type=f32) + b1)
    ff = jnp.dot(h1, w2_ref[...], preferred_element_type=f32) + b2

    out_ref[...] = (x1 + ff).astype(out_ref.dtype)


def encoder_layer_pallas(x, token_ids, params):
    """x: (B, S, H) embeddings; token_ids: (B, S) int32. Returns (B, S, H)."""
    B, S, H = x.shape
    N = B * S
    GN = HEADS * N

    # ----- wrapper-side packing (plain XLA glue, negligible) -----
    x2 = x.reshape(N, H)

    # Additive attention bias over the folded batch:
    #   bias[bq*S+i, h*N + (bk*S+j)] = 0 if (bq == bk and token_ids[bk, j] > 0) else -1e9
    key_ok = (token_ids > 0)                                      # (B, S)
    same_b = jnp.eye(B, dtype=bool)[:, None, :, None]             # (B,1,B,1)
    ok = same_b & key_ok[None, None, :, :]                        # (B,1,B,S)
    ok = jnp.broadcast_to(ok, (B, S, B, S)).reshape(N, N)
    bias = jnp.where(ok, 0.0, NEG_INF).astype(jnp.float32)        # (N, N)
    bias = jnp.tile(bias, (1, HEADS))                             # (N, HEADS*N)

    # Static head-structure constants (folded into the jitted program).
    row_head = np.arange(GN) // N                                 # head index of expanded row
    col_head = np.arange(H) // D_K                                # head index of channel
    head_mask = jnp.asarray((row_head[:, None] == col_head[None, :]).astype(np.float32))  # (GN, H)
    block_ones = jnp.asarray((row_head[:, None] == row_head[None, :]).astype(np.float32)) # (GN, GN)

    # Fused QKV weight and one packed (8, 128) tile with every small vector parameter.
    wqkv = jnp.concatenate([params["wq"], params["wk"], params["wv"]], axis=1)  # (H, 3H)
    vec = jnp.zeros((8, VEC_W), jnp.float32)
    vec = vec.at[0, 0:3 * H].set(
        jnp.concatenate([params["bq"][0], params["bk"][0], params["bv"][0]]))
    vec = vec.at[1, 0:H].set(params["bo"][0])
    vec = vec.at[2, 0:H].set(params["ln1_g"][0])
    vec = vec.at[3, 0:H].set(params["ln1_b"][0])
    vec = vec.at[4, 0:H].set(params["ln2_g"][0])
    vec = vec.at[5, 0:H].set(params["ln2_b"][0])
    vec = vec.at[6, 0:FF].set(params["b1"][0])
    vec = vec.at[7, 0:H].set(params["b2"][0])

    vmem_spec = pl.BlockSpec(memory_space=pltpu.MemorySpace.VMEM)
    out2 = pl.pallas_call(
        encoder_kernel,
        out_shape=jax.ShapeDtypeStruct((N, H), jnp.float32),
        in_specs=[vmem_spec] * 9,
        out_specs=vmem_spec,
    )(x2, bias, head_mask, block_ones, wqkv, params["wo"], params["w1"], params["w2"], vec)

    return out2.reshape(B, S, H)


# ---------------- embeddings (plain-JAX glue) ----------------
def sinusoidal_position_table(seq_len, d_model):
    pos = np.arange(seq_len, dtype=np.float32)[:, None]
    i = np.arange(d_model, dtype=np.float32)[None, :]
    angle = pos / np.power(10000.0, (2.0 * (i // 2)) / d_model)
    pe = np.where(np.arange(d_model)[None, :] % 2 == 0, np.sin(angle), np.cos(angle))
    return jnp.asarray(pe, dtype=jnp.float32)


def bert_embedding(token_ids, segment_ids, params):
    tok = jnp.take(params["tok_table"], token_ids, axis=0)     # (B,S,H)
    seg = jnp.take(params["seg_table"], segment_ids, axis=0)   # (B,S,H)
    pos = params["pos_table"][None, : token_ids.shape[1], :]   # (1,S,H)
    # TODO(synk): EmbeddingLayer dropout omitted (deterministic / eval mode).
    return tok + seg + pos


# ---------------- full BERT forward (one encoder layer, as the reference forward does) ----------------
def bert_forward(token_ids, segment_ids, params):
    x = bert_embedding(token_ids, segment_ids, params)
    # The PyTorch forward `return`s inside the encoder loop => only the first encoder runs.
    return encoder_layer_pallas(x, token_ids, params)


# ---------------- pure-JAX reference (sanity check of the same math) ----------------
def encoder_layer_ref(x, mask, p):
    def ln(v, g, b, eps=1e-6):
        mu = v.mean(-1, keepdims=True)
        var = ((v - mu) ** 2).mean(-1, keepdims=True)
        return g * (v - mu) / jnp.sqrt(var + eps) + b

    def gelu(v):
        return 0.5 * v * (1.0 + jnp.tanh(0.7978845608028654 * (v + 0.044715 * v ** 3)))

    B, S, H = x.shape
    xn = ln(x, p["ln1_g"][0], p["ln1_b"][0])
    q = xn @ p["wq"] + p["bq"][0]
    k = xn @ p["wk"] + p["bk"][0]
    v = xn @ p["wv"] + p["bv"][0]
    q = q.reshape(B, S, HEADS, D_K).transpose(0, 2, 1, 3)
    k = k.reshape(B, S, HEADS, D_K).transpose(0, 2, 1, 3)
    v = v.reshape(B, S, HEADS, D_K).transpose(0, 2, 1, 3)
    s = jnp.einsum("bhqd,bhkd->bhqk", q, k) / math.sqrt(D_K)
    s = jnp.where(mask[:, None, :, :] > 0, s, NEG_INF)
    pr = jax.nn.softmax(s, axis=-1)
    ctx = jnp.einsum("bhqk,bhkd->bhqd", pr, v).transpose(0, 2, 1, 3).reshape(B, S, H)
    x1 = x + ctx @ p["wo"] + p["bo"][0]
    xn2 = ln(x1, p["ln2_g"][0], p["ln2_b"][0])
    ff = gelu(xn2 @ p["w1"] + p["b1"][0]) @ p["w2"] + p["b2"][0]
    return x1 + ff


# ---------------- deterministic parameter init ----------------
def init_params(key):
    ks = jax.random.split(key, 8)
    std = 0.02
    p = {}
    p["tok_table"] = jax.random.normal(ks[0], (VOCAB, HIDDEN), jnp.float32) * std
    p["tok_table"] = p["tok_table"].at[0].set(0.0)   # padding_idx=0
    p["seg_table"] = jax.random.normal(ks[1], (3, HIDDEN), jnp.float32) * std
    p["seg_table"] = p["seg_table"].at[0].set(0.0)   # padding_idx=0
    p["pos_table"] = sinusoidal_position_table(SEQ, HIDDEN)

    p["wq"] = jax.random.normal(ks[2], (HIDDEN, HIDDEN), jnp.float32) * std
    p["wk"] = jax.random.normal(ks[3], (HIDDEN, HIDDEN), jnp.float32) * std
    p["wv"] = jax.random.normal(ks[4], (HIDDEN, HIDDEN), jnp.float32) * std
    p["wo"] = jax.random.normal(ks[5], (HIDDEN, HIDDEN), jnp.float32) * std
    p["bq"] = jnp.zeros((1, HIDDEN), jnp.float32)
    p["bk"] = jnp.zeros((1, HIDDEN), jnp.float32)
    p["bv"] = jnp.zeros((1, HIDDEN), jnp.float32)
    p["bo"] = jnp.zeros((1, HIDDEN), jnp.float32)

    p["ln1_g"] = jnp.ones((1, HIDDEN), jnp.float32)
    p["ln1_b"] = jnp.zeros((1, HIDDEN), jnp.float32)
    p["ln2_g"] = jnp.ones((1, HIDDEN), jnp.float32)
    p["ln2_b"] = jnp.zeros((1, HIDDEN), jnp.float32)

    p["w1"] = jax.random.normal(ks[6], (HIDDEN, FF), jnp.float32) * std
    p["b1"] = jnp.zeros((1, FF), jnp.float32)
    p["w2"] = jax.random.normal(ks[7], (FF, HIDDEN), jnp.float32) * std
    p["b2"] = jnp.zeros((1, HIDDEN), jnp.float32)
    return p


if __name__ == "__main__":
    key = jax.random.PRNGKey(0)
    k_tok, k_seg, k_par = jax.random.split(key, 3)

    token_ids = jax.random.randint(k_tok, (BATCH, SEQ), 0, VOCAB, dtype=jnp.int32)
    segment_ids = jax.random.randint(k_seg, (BATCH, SEQ), 1, 3, dtype=jnp.int32)
    params = init_params(k_par)

    out = jax.jit(bert_forward)(token_ids, segment_ids, params)
    out = jax.block_until_ready(out)

    # sanity check against a pure-JAX reference of the same math
    B, S = token_ids.shape
    mask = jnp.broadcast_to((token_ids > 0).astype(jnp.float32)[:, None, :], (B, S, S))
    x_emb = bert_embedding(token_ids, segment_ids, params)
    ref = encoder_layer_ref(x_emb, mask, params)
    # tolerance allows for pl.reciprocal(approx=True) in the softmax denominator
    np.testing.assert_allclose(np.asarray(out), np.asarray(ref), rtol=1e-3, atol=1e-3)

    print("KERNEL_OK")
</pallas_src>

<mosaic_0001>
module attributes {stable_mosaic.version = 11 : i64} {
  func.func @encoder_kernel(%arg0: memref<16x32xf32, #tpu.memory_space<vmem>>, %arg1: memref<16x64xf32, #tpu.memory_space<vmem>>, %arg2: memref<64x32xf32, #tpu.memory_space<vmem>>, %arg3: memref<64x64xf32, #tpu.memory_space<vmem>>, %arg4: memref<32x96xf32, #tpu.memory_space<vmem>>, %arg5: memref<32x32xf32, #tpu.memory_space<vmem>>, %arg6: memref<32x128xf32, #tpu.memory_space<vmem>>, %arg7: memref<128x32xf32, #tpu.memory_space<vmem>>, %arg8: memref<8x128xf32, #tpu.memory_space<vmem>>, %arg9: memref<16x32xf32, #tpu.memory_space<vmem>>) attributes {dimension_semantics = [], scalar_prefetch = 0 : i64, scratch_operands = 0 : i64, tpu.core_type = #tpu.core_type<tc>} {
    %c0 = arith.constant 0 : index
    %c0_0 = arith.constant 0 : index
    %0 = vector.load %arg0[%c0, %c0_0] : memref<16x32xf32, #tpu.memory_space<vmem>>, vector<16x32xf32>
    %c0_1 = arith.constant 0 : index
    %c0_2 = arith.constant 0 : index
    %1 = vector.load %arg1[%c0_1, %c0_2] : memref<16x64xf32, #tpu.memory_space<vmem>>, vector<16x64xf32>
    %c0_3 = arith.constant 0 : index
    %c0_4 = arith.constant 0 : index
    %2 = vector.load %arg2[%c0_3, %c0_4] : memref<64x32xf32, #tpu.memory_space<vmem>>, vector<64x32xf32>
    %c0_5 = arith.constant 0 : index
    %c0_6 = arith.constant 0 : index
    %3 = vector.load %arg3[%c0_5, %c0_6] : memref<64x64xf32, #tpu.memory_space<vmem>>, vector<64x64xf32>
    %c0_7 = arith.constant 0 : index
    %c0_8 = arith.constant 0 : index
    %4 = vector.load %arg8[%c0_7, %c0_8] : memref<8x128xf32, #tpu.memory_space<vmem>>, vector<1x96xf32>
    %c1 = arith.constant 1 : index
    %c0_9 = arith.constant 0 : index
    %5 = vector.load %arg8[%c1, %c0_9] : memref<8x128xf32, #tpu.memory_space<vmem>>, vector<1x32xf32>
    %c2 = arith.constant 2 : index
    %c0_10 = arith.constant 0 : index
    %6 = vector.load %arg8[%c2, %c0_10] : memref<8x128xf32, #tpu.memory_space<vmem>>, vector<1x32xf32>
    %c3 = arith.constant 3 : index
    %c0_11 = arith.constant 0 : index
    %7 = vector.load %arg8[%c3, %c0_11] : memref<8x128xf32, #tpu.memory_space<vmem>>, vector<1x32xf32>
    %c4 = arith.constant 4 : index
    %c0_12 = arith.constant 0 : index
    %8 = vector.load %arg8[%c4, %c0_12] : memref<8x128xf32, #tpu.memory_space<vmem>>, vector<1x32xf32>
    %c5 = arith.constant 5 : index
    %c0_13 = arith.constant 0 : index
    %9 = vector.load %arg8[%c5, %c0_13] : memref<8x128xf32, #tpu.memory_space<vmem>>, vector<1x32xf32>
    %c6 = arith.constant 6 : index
    %c0_14 = arith.constant 0 : index
    %10 = vector.load %arg8[%c6, %c0_14] : memref<8x128xf32, #tpu.memory_space<vmem>>, vector<1x128xf32>
    %c7 = arith.constant 7 : index
    %c0_15 = arith.constant 0 : index
    %11 = vector.load %arg8[%c7, %c0_15] : memref<8x128xf32, #tpu.memory_space<vmem>>, vector<1x32xf32>
    %cst = arith.constant dense<0.000000e+00> : vector<16xf32>
    %12 = vector.multi_reduction <add>, %0, %cst [1] : vector<16x32xf32> to vector<16xf32>
    %13 = vector.shape_cast %12 : vector<16xf32> to vector<16x1xf32>
    %cst_16 = arith.constant 3.200000e+01 : f32
    %14 = vector.broadcast %cst_16 : f32 to vector<16x1xf32>
    %15 = arith.divf %13, %14 : vector<16x1xf32>
    %16 = vector.broadcast %15 : vector<16x1xf32> to vector<16x32xf32>
    %17 = arith.subf %0, %16 : vector<16x32xf32>
    %18 = arith.mulf %17, %17 : vector<16x32xf32>
    %cst_17 = arith.constant dense<0.000000e+00> : vector<16xf32>
    %19 = vector.multi_reduction <add>, %18, %cst_17 [1] : vector<16x32xf32> to vector<16xf32>
    %20 = vector.shape_cast %19 : vector<16xf32> to vector<16x1xf32>
    %cst_18 = arith.constant 3.200000e+01 : f32
    %21 = vector.broadcast %cst_18 : f32 to vector<16x1xf32>
    %22 = arith.divf %20, %21 : vector<16x1xf32>
    %23 = vector.broadcast %6 : vector<1x32xf32> to vector<16x32xf32>
    %24 = arith.mulf %23, %17 : vector<16x32xf32>
    %cst_19 = arith.constant 9.99999997E-7 : f32
    %25 = vector.broadcast %cst_19 : f32 to vector<16x1xf32>
    %26 = arith.addf %22, %25 : vector<16x1xf32>
    %27 = math.rsqrt %26 : vector<16x1xf32>
    %28 = vector.broadcast %27 : vector<16x1xf32> to vector<16x32xf32>
    %29 = arith.mulf %24, %28 : vector<16x32xf32>
    %30 = vector.broadcast %7 : vector<1x32xf32> to vector<16x32xf32>
    %31 = arith.addf %29, %30 : vector<16x32xf32>
    %c0_20 = arith.constant 0 : index
    %c0_21 = arith.constant 0 : index
    %32 = vector.load %arg4[%c0_20, %c0_21] : memref<32x96xf32, #tpu.memory_space<vmem>>, vector<32x96xf32>
    %cst_22 = arith.constant dense<0.000000e+00> : vector<16x96xf32>
    %33 = tpu.matmul %31, %32, %cst_22 {dimension_numbers = #tpu.dot_dimension_numbers<[1], [0], [0], [1], [0, 0, 1, 1], [], []>} : vector<16x32xf32>, vector<32x96xf32>, vector<16x96xf32> -> vector<16x96xf32>
    %34 = vector.broadcast %4 : vector<1x96xf32> to vector<16x96xf32>
    %35 = arith.addf %33, %34 : vector<16x96xf32>
    %36 = vector.extract_strided_slice %35 {offsets = [0, 0], sizes = [16, 32], strides = [1, 1]} : vector<16x96xf32> to vector<16x32xf32>
    %37 = vector.extract_strided_slice %35 {offsets = [0, 32], sizes = [16, 32], strides = [1, 1]} : vector<16x96xf32> to vector<16x32xf32>
    %38 = vector.extract_strided_slice %35 {offsets = [0, 64], sizes = [16, 32], strides = [1, 1]} : vector<16x96xf32> to vector<16x32xf32>
    %39 = tpu.concatenate %37, %37, %37, %37 in 0 : vector<16x32xf32>, vector<16x32xf32>, vector<16x32xf32>, vector<16x32xf32> -> vector<64x32xf32>
    %40 = arith.mulf %39, %2 : vector<64x32xf32>
    %41 = tpu.concatenate %38, %38, %38, %38 in 0 : vector<16x32xf32>, vector<16x32xf32>, vector<16x32xf32>, vector<16x32xf32> -> vector<64x32xf32>
    %42 = arith.mulf %41, %2 : vector<64x32xf32>
    %cst_23 = arith.constant dense<0.000000e+00> : vector<16x64xf32>
    %43 = tpu.matmul %36, %40, %cst_23 {dimension_numbers = #tpu.dot_dimension_numbers<[1], [1], [0], [0], [0, 0, 1, 0], [], []>} : vector<16x32xf32>, vector<64x32xf32>, vector<16x64xf32> -> vector<16x64xf32>
    %cst_24 = arith.constant 0.353553385 : f32
    %44 = vector.broadcast %cst_24 : f32 to vector<16x64xf32>
    %45 = arith.mulf %43, %44 : vector<16x64xf32>
    %46 = arith.addf %45, %1 : vector<16x64xf32>
    %cst_25 = arith.constant dense<0xFF800000> : vector<16xf32>
    %47 = vector.multi_reduction <maximumf>, %46, %cst_25 [1] : vector<16x64xf32> to vector<16xf32>
    %48 = vector.shape_cast %47 : vector<16xf32> to vector<16x1xf32>
    %49 = vector.broadcast %48 : vector<16x1xf32> to vector<16x64xf32>
    %50 = arith.subf %46, %49 : vector<16x64xf32>
    %51 = math.exp %50 : vector<16x64xf32>
    %cst_26 = arith.constant dense<0.000000e+00> : vector<16x64xf32>
    %52 = tpu.matmul %51, %3, %cst_26 {dimension_numbers = #tpu.dot_dimension_numbers<[1], [0], [0], [1], [0, 0, 1, 1], [], []>} : vector<16x64xf32>, vector<64x64xf32>, vector<16x64xf32> -> vector<16x64xf32>
    %53 = tpu.reciprocal %52 {approx = true} : vector<16x64xf32> -> vector<16x64xf32>
    %54 = arith.mulf %51, %53 : vector<16x64xf32>
    %cst_27 = arith.constant dense<0.000000e+00> : vector<16x32xf32>
    %55 = tpu.matmul %54, %42, %cst_27 {dimension_numbers = #tpu.dot_dimension_numbers<[1], [0], [0], [1], [0, 0, 1, 1], [], []>} : vector<16x64xf32>, vector<64x32xf32>, vector<16x32xf32> -> vector<16x32xf32>
    %c0_28 = arith.constant 0 : index
    %c0_29 = arith.constant 0 : index
    %56 = vector.load %arg5[%c0_28, %c0_29] : memref<32x32xf32, #tpu.memory_space<vmem>>, vector<32x32xf32>
    %cst_30 = arith.constant dense<0.000000e+00> : vector<16x32xf32>
    %57 = tpu.matmul %55, %56, %cst_30 {dimension_numbers = #tpu.dot_dimension_numbers<[1], [0], [0], [1], [0, 0, 1, 1], [], []>} : vector<16x32xf32>, vector<32x32xf32>, vector<16x32xf32> -> vector<16x32xf32>
    %58 = vector.broadcast %5 : vector<1x32xf32> to vector<16x32xf32>
    %59 = arith.addf %57, %58 : vector<16x32xf32>
    %60 = arith.addf %0, %59 : vector<16x32xf32>
    %cst_31 = arith.constant dense<0.000000e+00> : vector<16xf32>
    %61 = vector.multi_reduction <add>, %60, %cst_31 [1] : vector<16x32xf32> to vector<16xf32>
    %62 = vector.shape_cast %61 : vector<16xf32> to vector<16x1xf32>
    %cst_32 = arith.constant 3.200000e+01 : f32
    %63 = vector.broadcast %cst_32 : f32 to vector<16x1xf32>
    %64 = arith.divf %62, %63 : vector<16x1xf32>
    %65 = vector.broadcast %64 : vector<16x1xf32> to vector<16x32xf32>
    %66 = arith.subf %60, %65 : vector<16x32xf32>
    %67 = arith.mulf %66, %66 : vector<16x32xf32>
    %cst_33 = arith.constant dense<0.000000e+00> : vector<16xf32>
    %68 = vector.multi_reduction <add>, %67, %cst_33 [1] : vector<16x32xf32> to vector<16xf32>
    %69 = vector.shape_cast %68 : vector<16xf32> to vector<16x1xf32>
    %cst_34 = arith.constant 3.200000e+01 : f32
    %70 = vector.broadcast %cst_34 : f32 to vector<16x1xf32>
    %71 = arith.divf %69, %70 : vector<16x1xf32>
    %72 = vector.broadcast %8 : vector<1x32xf32> to vector<16x32xf32>
    %73 = arith.mulf %72, %66 : vector<16x32xf32>
    %cst_35 = arith.constant 9.99999997E-7 : f32
    %74 = vector.broadcast %cst_35 : f32 to vector<16x1xf32>
    %75 = arith.addf %71, %74 : vector<16x1xf32>
    %76 = math.rsqrt %75 : vector<16x1xf32>
    %77 = vector.broadcast %76 : vector<16x1xf32> to vector<16x32xf32>
    %78 = arith.mulf %73, %77 : vector<16x32xf32>
    %79 = vector.broadcast %9 : vector<1x32xf32> to vector<16x32xf32>
    %80 = arith.addf %78, %79 : vector<16x32xf32>
    %c0_36 = arith.constant 0 : index
    %c0_37 = arith.constant 0 : index
    %81 = vector.load %arg6[%c0_36, %c0_37] : memref<32x128xf32, #tpu.memory_space<vmem>>, vector<32x128xf32>
    %cst_38 = arith.constant dense<0.000000e+00> : vector<16x128xf32>
    %82 = tpu.matmul %80, %81, %cst_38 {dimension_numbers = #tpu.dot_dimension_numbers<[1], [0], [0], [1], [0, 0, 1, 1], [], []>} : vector<16x32xf32>, vector<32x128xf32>, vector<16x128xf32> -> vector<16x128xf32>
    %83 = vector.broadcast %10 : vector<1x128xf32> to vector<16x128xf32>
    %84 = arith.addf %82, %83 : vector<16x128xf32>
    %cst_39 = arith.constant 5.000000e-01 : f32
    %85 = vector.broadcast %cst_39 : f32 to vector<16x128xf32>
    %86 = arith.mulf %85, %84 : vector<16x128xf32>
    %cst_40 = arith.constant 4.471500e-02 : f32
    %87 = vector.broadcast %cst_40 : f32 to vector<16x128xf32>
    %88 = arith.mulf %87, %84 : vector<16x128xf32>
    %89 = arith.mulf %88, %84 : vector<16x128xf32>
    %90 = arith.mulf %89, %84 : vector<16x128xf32>
    %91 = arith.addf %84, %90 : vector<16x128xf32>
    %cst_41 = arith.constant 0.797884583 : f32
    %92 = vector.broadcast %cst_41 : f32 to vector<16x128xf32>
    %93 = arith.mulf %92, %91 : vector<16x128xf32>
    %94 = math.tanh %93 : vector<16x128xf32>
    %cst_42 = arith.constant 1.000000e+00 : f32
    %95 = vector.broadcast %cst_42 : f32 to vector<16x128xf32>
    %96 = arith.addf %95, %94 : vector<16x128xf32>
    %97 = arith.mulf %86, %96 : vector<16x128xf32>
    %c0_43 = arith.constant 0 : index
    %c0_44 = arith.constant 0 : index
    %98 = vector.load %arg7[%c0_43, %c0_44] : memref<128x32xf32, #tpu.memory_space<vmem>>, vector<128x32xf32>
    %cst_45 = arith.constant dense<0.000000e+00> : vector<16x32xf32>
    %99 = tpu.matmul %97, %98, %cst_45 {dimension_numbers = #tpu.dot_dimension_numbers<[1], [0], [0], [1], [0, 0, 1, 1], [], []>} : vector<16x128xf32>, vector<128x32xf32>, vector<16x32xf32> -> vector<16x32xf32>
    %100 = vector.broadcast %11 : vector<1x32xf32> to vector<16x32xf32>
    %101 = arith.addf %99, %100 : vector<16x32xf32>
    %102 = arith.addf %60, %101 : vector<16x32xf32>
    %c0_46 = arith.constant 0 : index
    %c0_47 = arith.constant 0 : index
    %103 = vector.load %arg9[%c0_46, %c0_47] : memref<16x32xf32, #tpu.memory_space<vmem>>, vector<16x32xf32>
    tpu.vector_store %arg9[%c0_46, %c0_47], %102 {strides = array<i32>} : memref<16x32xf32, #tpu.memory_space<vmem>>, vector<16x32xf32>,
    return
  }
}

</mosaic_0001>

<bundles_post_ra>
// kernel: tile.9
= control target key start
LH: loop header
LB: loop body
LE: loop exit
PB: predicated region body
PF: predicated region fallthrough
CT: control target
= control target key end

     0   :  { %vm68_vm0 = vcmask 1047556   ;;  %s167_s9 = smov 32   ;;  %s168_s10 = smov 16   ;;  %vm70_vm1 = vcmask 130048   ;;  %vm89_vm2 = vcmask 523648   ;;  %vm110_vm3 = vcmask 392448   ;;  %s259_s0 = inlined_call_operand.vmem [shape: f32[16,4,16], index: 0, kind: input, shape index: {}]   ;;  %s260_s1 = inlined_call_operand.vmem [shape: f32[16,64], index: 1, kind: output, shape index: {}]  }
   0x1   :  { %v152_v0 = vld [vmem:[%s259_s0 + $0x1c] sm:$0xf]  ;;  %v153_v1 = vld [vmem:[%s259_s0 + $0x18] sm:$0xf]  ;;  %v154_v2 = vld [vmem:[%s259_s0 + $0x14] sm:$0xf] }
   0x2   :  { %39 = vst [vmem:[#allocation0 + $0x38] sm:$0xf] %v152_v0  ;;  %v155_v3 = vld [vmem:[%s259_s0 + $0x10] sm:$0xf]  ;;  %v156_v4 = vld [vmem:[%s259_s0 + $0xc] sm:$0xf] }
   0x3   :  { %43 = vst [vmem:[#allocation0 + $0x30] sm:$0xf] %v153_v1  ;;  %v157_v5 = vld [vmem:[%s259_s0 + $0x8] sm:$0xf]  ;;  %v158_v6 = vld [vmem:[%s259_s0 + $0x4] sm:$0xf] }
   0x4   :  { %47 = vst [vmem:[#allocation0 + $0x28] sm:$0xf] %v154_v2  ;;  %v64_v7 = vld [vmem:[%s259_s0] sm:$0xf]  ;;  %v144_v8 = vld [vmem:[%s259_s0 + $0x3c] sm:$0xf] }
   0x5   :  { %51 = vst [vmem:[#allocation0 + $0x20] sm:$0xf] %v155_v3  ;;  %v145_v9 = vld [vmem:[%s259_s0 + $0x38] sm:$0xf]  ;;  %v146_v10 = vld [vmem:[%s259_s0 + $0x34] sm:$0xf] }
   0x6   :  { %55 = vst [vmem:[#allocation0 + $0x18] sm:$0xf] %v156_v4  ;;  %v147_v11 = vld [vmem:[%s259_s0 + $0x30] sm:$0xf]  ;;  %v148_v12 = vld [vmem:[%s259_s0 + $0x2c] sm:$0xf] }
   0x7   :  { %59 = vst [vmem:[#allocation0 + $0x10] sm:$0xf] %v157_v5  ;;  %v149_v13 = vld [vmem:[%s259_s0 + $0x28] sm:$0xf]  ;;  %v150_v15 = vld [vmem:[%s259_s0 + $0x24] sm:$0xf] }
   0x8   :  { %63 = vst [vmem:[#allocation0 + $0x8] sm:$0xf] %v158_v6  ;;  %v151_v17 = vld [vmem:[%s259_s0 + $0x20] sm:$0xf]  ;;  %s166_s0 = smov 48   ;;  %vm131_vm4 = vcmask 261248  }
   0x9   :  { %65 = vst [vmem:[#allocation0] sm:$0xf] %v64_v7 }
   0xa   :  { %7 = vst [vmem:[#allocation0 + $0x78] sm:$0xf] %v144_v8 }
   0xb   :  { %11 = vst [vmem:[#allocation0 + $0x70] sm:$0xf] %v145_v9 }
   0xc   :  { %v84_v14 = vld [vmem:[#allocation0 + $0x3] ss:$8 sm:$0xf0]   ;;  %15 = vst [vmem:[#allocation0 + $0x68] sm:$0xf] %v146_v10 }
   0xd   :  { %v105_v16 = vld [vmem:[#allocation0 + $0x2] ss:$8 sm:$0xf0]   ;;  %19 = vst [vmem:[#allocation0 + $0x60] sm:$0xf] %v147_v11 }
   0xe   :  { %23 = vst [vmem:[#allocation0 + $0x58] sm:$0xf] %v148_v12  ;;  %v126_v18 = vld [vmem:[#allocation0 + $0x1] ss:$8 sm:$0xf0]  }
   0xf   :  { %27 = vst [vmem:[#allocation0 + $0x50] sm:$0xf] %v149_v13  ;;  %v67_v35 = vld [vmem:[#allocation0] ss:$8 sm:$0xf0]  }
  0x10   :  { %v82_v19 = vld [vmem:[#allocation0 + $0x3] ss:$8 sm:$0xf]   ;;  %v103_v20 = vld [vmem:[#allocation0 + $0x2] ss:$8 sm:$0xf]  }
  0x11   :  { %v86_v21 = vsel %vm68_vm0, %v84_v14, %v82_v19  ;;  %v107_v22 = vsel %vm68_vm0, %v105_v16, %v103_v20  ;;  %v124_v23 = vld [vmem:[#allocation0 + $0x1] ss:$8 sm:$0xf]   ;;  %31 = vst [vmem:[#allocation0 + $0x48] sm:$0xf] %v150_v15 }
  0x12   :  { %87 = vrot.lane.b32.xlu0 %v86_v21, %s166_s0  ;;  %108 = vrot.lane.b32.xlu1 %v107_v22, %s167_s9  ;;  %v128_v24 = vsel %vm68_vm0, %v126_v18, %v124_v23  ;;  %35 = vst [vmem:[#allocation0 + $0x40] sm:$0xf] %v151_v17  ;;  %v66_v34 = vld [vmem:[#allocation0] ss:$8 sm:$0xf]  }
  0x13   :  { %129 = vrot.lane.b32.xlu2 %v128_v24, %s168_s10  ;;  %v69_v36 = vsel %vm68_vm0, %v67_v35, %v66_v34 }
  0x14   :  { %v94_v25 = vld [vmem:[#allocation0 + $0x43] ss:$8 sm:$0xf0]   ;;  %v115_v26 = vld [vmem:[#allocation0 + $0x42] ss:$8 sm:$0xf0]  }
  0x15   :  { %v136_v27 = vld [vmem:[#allocation0 + $0x41] ss:$8 sm:$0xf0]   ;;  %71 = vst.msk [vmem:[%s260_s1] sm:$0xff] %vm70_vm1, %v69_v36  }
  0x16   :  { %v75_v38 = vld [vmem:[#allocation0 + $0x40] ss:$8 sm:$0xf0]  }
  0x19   :  { %v92_v28 = vld [vmem:[#allocation0 + $0x43] ss:$8 sm:$0xf]   ;;  %v113_v29 = vld [vmem:[#allocation0 + $0x42] ss:$8 sm:$0xf]  }
  0x1a   :  { %v96_v30 = vsel %vm68_vm0, %v94_v25, %v92_v28  ;;  %v117_v31 = vsel %vm68_vm0, %v115_v26, %v113_v29  ;;  %v134_v32 = vld [vmem:[#allocation0 + $0x41] ss:$8 sm:$0xf]   ;;  %v73_v37 = vld [vmem:[#allocation0 + $0x40] ss:$8 sm:$0xf]  }
  0x1b   :  { %97 = vrot.lane.b32.xlu0 %v96_v30, %s166_s0  ;;  %118 = vrot.lane.b32.xlu1 %v117_v31, %s167_s9  ;;  %v138_v33 = vsel %vm68_vm0, %v136_v27, %v134_v32  ;;  %v77_v40 = vsel %vm68_vm0, %v75_v38, %v73_v37 }
  0x1c   :  { %139 = vrot.lane.b32.xlu2 %v138_v33, %s168_s10  ;;  %159 = vst.msk [vmem:[%s260_s1 + $0x8] sm:$0xff] %vm70_vm1, %v77_v40  }
  0x6d   :  { %v130_v39 = vpop.permute.xlu2 %129  }
  0x76   :  { %v140_v41 = vpop.permute.xlu2 %139  }
  0x84   :  { %v88_v42 = vpop.permute.xlu0 %87   ;;  %v109_v43 = vpop.permute.xlu1 %108  }
  0x85   :  { %90 = vst.msk [vmem:[%s260_s1] sm:$0xff] %vm89_vm2, %v88_v42  }
  0x86   :  { %111 = vst.msk [vmem:[%s260_s1] sm:$0xff] %vm110_vm3, %v109_v43  }
  0x87   :  { %132 = vst.msk [vmem:[%s260_s1] sm:$0xff] %vm131_vm4, %v130_v39  }
  0x8d   :  { %v98_v44 = vpop.permute.xlu0 %97   ;;  %v119_v45 = vpop.permute.xlu1 %118  }
  0x8e   :  { %160 = vst.msk [vmem:[%s260_s1 + $0x8] sm:$0xff] %vm89_vm2, %v98_v44  }
  0x8f   :  { %161 = vst.msk [vmem:[%s260_s1 + $0x8] sm:$0xff] %vm110_vm3, %v119_v45  }
  0x90   :  { %162 = vst.msk [vmem:[%s260_s1 + $0x8] sm:$0xff] %vm131_vm4, %v140_v41  }

// kernel: bert_forward.1
= control target key start
LH: loop header
LB: loop body
LE: loop exit
PB: predicated region body
PF: predicated region fallthrough
CT: control target
= control target key end

     0   :  { %vm61_vm0 = vcmask 261120   ;;  %s1068_s0 = inlined_call_operand.vmem [shape: f32[16,32], index: 0, kind: input, shape index: {}]   ;;  %s1069_s1 = inlined_call_operand.vmem [shape: f32[16,64], index: 1, kind: input, shape index: {}]   ;;  %s1070_s2 = inlined_call_operand.vmem [shape: f32[64,32], index: 2, kind: input, shape index: {}]   ;;  %s1071_s3 = inlined_call_operand.vmem [shape: f32[64,64], index: 3, kind: input, shape index: {}]   ;;  %s1072_s4 = inlined_call_operand.vmem [shape: f32[32,96], index: 4, kind: input, shape index: {}]   ;;  %s1073_s5 = inlined_call_operand.vmem [shape: f32[32,32], index: 5, kind: input, shape index: {}]   ;;  %s1074_s6 = inlined_call_operand.vmem [shape: f32[32,128], index: 6, kind: input, shape index: {}]   ;;  %s1075_s7 = inlined_call_operand.vmem [shape: f32[128,32], index: 7, kind: input, shape index: {}]   ;;  %s1076_s8 = inlined_call_operand.vmem [shape: f32[8,128], index: 8, kind: input, shape index: {}]   ;;  %s1077_s9 = inlined_call_operand.hbm [shape: f32[16,32], index: 9, kind: output, shape index: {}]  }
   0x1   :  { %v768_v0 = vld [vmem:[%s1068_s0] sm:$0xff]  ;;  %v775_v2 = vld [vmem:[%s1068_s0 + $0x8] sm:$0xff] }
   0x2   :  { %v62_v1 = vsel %vm61_vm0, %v768_v0, 0.0 }
   0x3   :  { %63 = vadd.xlane.f32.xlu0 %v62_v1 }
   0x4   :  { %14 = vsyncpa [#allocation3], 0  ;;  %v65_v3 = vsel %vm61_vm0, %v775_v2, 0.0  ;;  %v708_v4 = vmov 32.0   ;;  %v122_v21 = vld [vmem:[%s1072_s4 + $0x18] sm:$0xff]  ;;  %v121_v22 = vld [vmem:[%s1072_s4 + $0x10] sm:$0xff] }
   0x5   :  { %660 = vrcp.f32 %v708_v4  ;;  %142 = vmatpush.msra.mxu0 %v122_v21  ;;  %v120_v23 = vld [vmem:[%s1072_s4 + $0x8] sm:$0xff]  ;;  %v119_v24 = vld [vmem:[%s1072_s4] sm:$0xff]  ;;  %s709_s22 = smov 32   ;;  %v810_v29 = vld [vmem:[%s1070_s2 + $0x38] sm:$0xff]  ;;  %s710_s20 = smov 96   ;;  %vm298_vm8 = vcmask 523264  }
   0x6   :  { %v802_v25 = vld [vmem:[%s1070_s2 + $0x28] sm:$0xff]  ;;  %v815_v30 = vld [vmem:[%s1070_s2] sm:$0xff]  ;;  %175 = vrot.lane.b32.xlu2 %v810_v29, %s709_s22  ;;  %v832_v34 = vld [vmem:[%s1070_s2 + $0x30] sm:$0xff]  ;;  %s712_s17 = smov [#allocation2]   ;;  %s714_s21 = smov 8  }
   0x7   :  { %143 = vmatpush.msra.mxu0 %v121_v22  ;;  %v820_v31 = vld [vmem:[%s1070_s2 + $0x20] sm:$0xff]  ;;  %v842_v41 = vld [vmem:[%s1070_s2 + $0x18] sm:$0xff]  ;;  %v852_v53 = vld [vmem:[%s1070_s2 + $0x10] sm:$0xff]  ;;  %s591_s18 = sshll.u32 %s712_s17, 4  ;;  %s592_s18 = int_to_ptr.vmem [resolvable:$true] %s591_s18 }
   0x8   :  { %v652_v40 = vld [vmem:[%s1076_s8 + $0x2] ss:$0 sm:$0xff]  ;;  %v653_v47 = vld [vmem:[%s1076_s8 + $0x3] ss:$0 sm:$0xff]  ;;  %v38_v60 = vld [vmem:[%s1070_s2 + $0x8] sm:$0xff]  ;;  %s711_s2 = smov 64  }
   0x9   :  { %144 = vmatpush.msra.mxu0 %v120_v23  ;;  %v654_v63 = vld [vmem:[%s1076_s8] ss:$0 sm:$0xff] }
   0xb   :  { %66 = vadd.xlane.f32.xlu0 %v65_v3  ;;  %v661_v5 = vpop.eup %660  ;;  %145 = vmatpush.msra.mxu0 %v119_v24 }
   0xc   :  { %v69_v6 = vmul.f32 32.0, %v661_v5  ;;  %vm73_vm1 = vweird.f32 %v661_v5 }
   0xe   :  { %v70_v7 = vsub.f32 1.0, %v69_v6  ;;  %173 = vrot.lane.b32.xlu2 %v832_v34, %s709_s22 }
  0x10   :  { %v71_v8 = vmul.f32 %v661_v5, %v70_v7 }
  0x12   :  { %v72_v9 = vadd.f32 %v661_v5, %v71_v8 }
  0x14   :  { %v779_v10 = vsel %vm73_vm1, %v661_v5, %v72_v9 }
  0x16   :  { %167 = vrot.lane.b32.xlu2 %v842_v41, %s709_s22 }
  0x1e   :  { %165 = vrot.lane.b32.xlu2 %v852_v53, %s709_s22 }
  0x1f   :  { %171 = vrot.lane.b32.xlu0 %v802_v25, %s709_s22 }
  0x26   :  { %163 = vrot.lane.b32.xlu2 %v38_v60, %s709_s22 }
  0x27   :  { %161 = vrot.lane.b32.xlu0 %v815_v30, %s709_s22 }
  0x60   :  { %v176_v61 = vpop.permute.xlu2 %175 }
  0x68   :  { %v174_v62 = vpop.permute.xlu2 %173 }
  0x70   :  { %v168_v5 = vpop.permute.xlu2 %167 }
  0x76   :  { %v64_v11 = vpop.xlane.xlu0 %63 }
  0x77   :  { %v75_v12 = vmul.f32 %v779_v10, %v64_v11 }
  0x79   :  { %v77_v13 = vsub.f32 %v768_v0, %v75_v12 }
  0x7b   :  { %v79_v14 = vmul.f32 %v77_v13, %v77_v13  ;;  %v90_v46 = vmul.f32 %v652_v40, %v77_v13  ;;  %v166_v13 = vpop.permute.xlu2 %165 }
  0x7d   :  { %v81_v15 = vsel %vm61_vm0, %v79_v14, 0.0 }
  0x7e   :  { %82 = vadd.xlane.f32.xlu1 %v81_v15  ;;  %v67_v16 = vpop.xlane.xlu0 %66 }
  0x7f   :  { %v76_v17 = vmul.f32 %v779_v10, %v67_v16 }
  0x81   :  { %v78_v18 = vsub.f32 %v775_v2, %v76_v17 }
  0x83   :  { %v80_v19 = vmul.f32 %v78_v18, %v78_v18  ;;  %v91_v56 = vmul.f32 %v652_v40, %v78_v18 }
  0x85   :  { %v84_v20 = vsel %vm61_vm0, %v80_v19, 0.0  ;;  %v164_v19 = vpop.permute.xlu2 %163 }
  0x86   :  { %85 = vadd.xlane.f32.xlu1 %v84_v20 }
  0x91   :  { %v172_v6 = vpop.permute.xlu0 %171 }
  0x99   :  { %v162_v15 = vpop.permute.xlu0 %161 }
  0x9f   :  { %169 = vrot.lane.b32.xlu1 %v820_v31, %s709_s22 }
  0xf1   :  { %v83_v26 = vpop.xlane.xlu1 %82 }
  0xf2   :  { %v87_v27 = vmul.f32 %v83_v26, %v779_v10 }
  0xf4   :  { %v92_v28 = vadd.f32 1e-06, %v87_v27 }
  0xf6   :  { %662 = vrsqrt.f32 %v92_v28  ;;  %vm100_vm3 = vweird.f32 %v92_v28 }
  0xf9   :  { %v86_v32 = vpop.xlane.xlu1 %85 }
  0xfa   :  { %v88_v33 = vmul.f32 %v86_v32, %v779_v10 }
  0xfc   :  { %v663_v35 = vpop.eup %662  ;;  %v93_v36 = vadd.f32 1e-06, %v88_v33 }
  0xfd   :  { %v95_v37 = vmul.f32 %v663_v35, %v92_v28  ;;  %vm101_vm2 = vweird.f32 %v663_v35 }
  0xfe   :  { %664 = vrsqrt.f32 %v93_v36  ;;  %vm102_vm4 = vmor %vm100_vm3, %vm101_vm2  ;;  %vm110_vm6 = vweird.f32 %v93_v36 }
  0xff   :  { %v96_v38 = vmul.f32 %v663_v35, %v95_v37 }
 0x101   :  { %v97_v39 = vmul.f32 0.5, %v96_v38 }
 0x103   :  { %v98_v42 = vsub.f32 1.5, %v97_v39 }
 0x104   :  { %v665_v43 = vpop.eup %664 }
 0x105   :  { %v99_v44 = vmul.f32 %v663_v35, %v98_v42  ;;  %v105_v45 = vmul.f32 %v665_v43, %v93_v36  ;;  %vm111_vm5 = vweird.f32 %v665_v43 }
 0x106   :  { %vm112_vm7 = vmor %vm110_vm6, %vm111_vm5 }
 0x107   :  { %v106_v48 = vmul.f32 %v665_v43, %v105_v45  ;;  %v103_v49 = vsel %vm102_vm4, %v663_v35, %v99_v44 }
 0x108   :  { %v114_v50 = vmul.f32 %v103_v49, %v90_v46  ;;  %v35_v46 = vld [vmem:[%s1069_s1] sm:$0xff] }
 0x109   :  { %v107_v51 = vmul.f32 0.5, %v106_v48 }
 0x10a   :  { %v117_v52 = vadd.f32 %v653_v47, %v114_v50  ;;  %v52_v50 = vld [vmem:[%s1071_s3 + $0x38] sm:$0xff] }
 0x10b   :  { %v108_v54 = vsub.f32 1.5, %v107_v51  ;;  %v51_v51 = vld [vmem:[%s1071_s3 + $0x30] sm:$0xff]  ;;  %325 = vmatpush.msra.mxu2 %v52_v50 }
 0x10c   :  { %605 = vmatmul.msk.f32.vlgmr.msra.gmra.mxu0 %vm61_vm0, %v117_v52  ;;  %v36_v52 = vld [vmem:[%s1069_s1 + $0x8] sm:$0xff] }
 0x10d   :  { %v109_v55 = vmul.f32 %v665_v43, %v108_v54  ;;  %326 = vmatpush.msra.mxu2 %v51_v51 }
 0x10f   :  { %v113_v57 = vsel %vm112_vm7, %v665_v43, %v109_v55 }
 0x110   :  { %v115_v58 = vmul.f32 %v113_v57, %v91_v56 }
 0x111   :  { %v170_v14 = vpop.permute.xlu1 %169 }
 0x112   :  { %v118_v59 = vadd.f32 %v653_v47, %v115_v58 }
 0x114   :  { %606 = vmatmul.msk.f32.gmra.mxu0 %vm61_vm0, %v118_v59 }
 0x189   :  { %v147_v1 = vpop.f32.mrf.mxu0 }
 0x18a   :  { %v865_v3 = vadd.f32 %v654_v63, %v147_v1  ;;  %v45_v1 = vld [vmem:[%s1071_s3] sm:$0xff] }
 0x18c   :  { %v191_v4 = vmul.f32 %v174_v62, %v865_v3  ;;  %v189_v16 = vmul.f32 %v170_v14, %v865_v3  ;;  %v185_v17 = vmul.f32 %v162_v15, %v865_v3  ;;  %v187_v18 = vmul.f32 %v166_v13, %v865_v3  ;;  %v49_v62 = vld [vmem:[%s1071_s3 + $0x20] sm:$0xff] }
 0x18e   :  { %245 = vrot.lane.b32.xlu1 %v191_v4, %s710_s20 }
 0x191   :  { %v150_v7 = vpop.f32.mrf.mxu0 }
 0x192   :  { %v868_v8 = vadd.f32 %v654_v63, %v150_v7  ;;  %v48_v63 = vld [vmem:[%s1071_s3 + $0x18] sm:$0xff] }
 0x194   :  { %v192_v9 = vmul.f32 %v176_v61, %v868_v8  ;;  %v188_v11 = vmul.f32 %v168_v5, %v868_v8  ;;  %v190_v12 = vmul.f32 %v172_v6, %v868_v8  ;;  %v186_v20 = vmul.f32 %v164_v19, %v868_v8  ;;  %v50_v61 = vld [vmem:[%s1071_s3 + $0x28] sm:$0xff] }
 0x195   :  { %327 = vmatpush.msra.mxu2 %v50_v61 }
 0x196   :  { %247 = vrot.lane.b32.xlu2 %v192_v9, %s710_s20  ;;  %239 = vrot.lane.b32.xlu1 %v188_v11, %s710_s20 }
 0x197   :  { %243 = vrot.lane.b32.xlu0 %v190_v12, %s710_s20  ;;  %328 = vmatpush.msra.mxu2 %v49_v62 }
 0x199   :  { %329 = vmatpush.msra.mxu2 %v48_v63 }
 0x19e   :  { %241 = vrot.lane.b32.xlu2 %v189_v16, %s710_s20  ;;  %233 = vrot.lane.b32.xlu1 %v185_v17, %s710_s20 }
 0x19f   :  { %237 = vrot.lane.b32.xlu0 %v187_v18, %s710_s20 }
 0x1a6   :  { %235 = vrot.lane.b32.xlu2 %v186_v20, %s710_s20  ;;  %207 = vrot.lane.b32.xlu1 %v810_v29, %s711_s2 }
 0x1ae   :  { %205 = vrot.lane.b32.xlu1 %v832_v34, %s711_s2 }
 0x1b6   :  { %203 = vrot.lane.b32.xlu1 %v802_v25, %s711_s2 }
 0x1be   :  { %201 = vrot.lane.b32.xlu1 %v820_v31, %s711_s2 }
 0x1c6   :  { %199 = vrot.lane.b32.xlu1 %v842_v41, %s711_s2 }
 0x1ce   :  { %195 = vrot.lane.b32.xlu1 %v38_v60, %s711_s2 }
 0x1f0   :  { %v248_v21 = vpop.permute.xlu2 %247 }
 0x1f1   :  { %607 = vmatpush.xpose.msk.msra.mxu1 %vm61_vm0, %v248_v21 }
 0x1f8   :  { %v242_v26 = vpop.permute.xlu2 %241 }
 0x200   :  { %v246_v22 = vpop.permute.xlu1 %245  ;;  %v236_v29 = vpop.permute.xlu2 %235 }
 0x201   :  { %608 = vmatpush.xpose.msk.msra.mxu1 %vm61_vm0, %v246_v22 }
 0x208   :  { %v240_v23 = vpop.permute.xlu1 %239 }
 0x209   :  { %v244_v24 = vpop.permute.xlu0 %243 }
 0x20a   :  { %609 = vmatpush.xpose.msk.msra.mxu1 %vm61_vm0, %v244_v24 }
 0x20e   :  { %610 = vmatpush.xpose.msk.msra.mxu1 %vm61_vm0, %v242_v26 }
 0x210   :  { %v234_v25 = vpop.permute.xlu1 %233 }
 0x211   :  { %v238_v27 = vpop.permute.xlu0 %237 }
 0x212   :  { %611 = vmatpush.xpose.msk.msra.mxu1 %vm61_vm0, %v240_v23 }
 0x216   :  { %612 = vmatpush.xpose.msk.msra.mxu1 %vm61_vm0, %v238_v27 }
 0x218   :  { %v208_v28 = vpop.permute.xlu1 %207 }
 0x219   :  { %v224_v32 = vmul.f32 %v208_v28, %v868_v8  ;;  %v407_v28 = vld [vmem:[%s1073_s5 + $0x10] sm:$0xff] }
 0x21a   :  { %613 = vmatpush.xpose.msk.msra.mxu1 %vm61_vm0, %v236_v29  ;;  %v406_v29 = vld [vmem:[%s1073_s5 + $0x8] sm:$0xff] }
 0x21e   :  { %614 = vmatpush.xpose.msk.msra.mxu1 %vm61_vm0, %v234_v25 }
 0x220   :  { %v206_v31 = vpop.permute.xlu1 %205 }
 0x221   :  { %v223_v33 = vmul.f32 %v206_v31, %v865_v3  ;;  %615 = vmatmul.msk.f32.vlgmr.msra.gmra.mxu1 %vm61_vm0, %v865_v3 }
 0x223   :  { %v632_v34 = vpack.i.bf16 %v223_v33, %v224_v32 }
 0x225   :  { %633 = vrot.lane.b32.xlu1 %v632_v34, %s711_s2  ;;  %v405_v34 = vld [vmem:[%s1073_s5] sm:$0xff] }
 0x228   :  { %v204_v35 = vpop.permute.xlu1 %203 }
 0x229   :  { %616 = vmatmul.msk.f32.gmra.mxu1 %vm61_vm0, %v868_v8  ;;  %v222_v37 = vmul.f32 %v204_v35, %v868_v8 }
 0x230   :  { %v202_v36 = vpop.permute.xlu1 %201 }
 0x231   :  { %v221_v38 = vmul.f32 %v202_v36, %v865_v3 }
 0x233   :  { %v637_v39 = vpack.i.bf16 %v221_v38, %v222_v37 }
 0x235   :  { %638 = vrot.lane.b32.xlu1 %v637_v39, %s711_s2  ;;  %v655_v39 = vld [vmem:[%s1076_s8 + $0x1] ss:$0 sm:$0xff] }
 0x238   :  { %v200_v40 = vpop.permute.xlu1 %199 }
 0x239   :  { %v220_v19 = vmul.f32 %v200_v40, %v868_v8 }
 0x240   :  { %v196_v41 = vpop.permute.xlu1 %195 }
 0x241   :  { %v218_v14 = vmul.f32 %v196_v41, %v868_v8 }
 0x297   :  { %v634_v42 = vpop.permute.xlu1 %633 }
 0x298   :  { %v635_v43 = vunpack.i.l.bf16 %v634_v42  ;;  %v636_v44 = vunpack.i.h.bf16 %v634_v42 }
 0x29a   :  { %390 = vmatpush.msrb.mxu0 %v635_v43 }
 0x29c   :  { %391 = vmatpush.msrb.mxu0 %v636_v44 }
 0x29e   :  { %v288_v45 = vpop.f32.mrf.mxu1 }
 0x29f   :  { %v294_v47 = vmul.f32 0.35355338, %v288_v45 }
 0x2a1   :  { %v296_v48 = vadd.f32 %v294_v47, %v35_v46 }
 0x2a3   :  { %v299_v49 = vsel %vm298_vm8, %v296_v48, -inf }
 0x2a4   :  { %300 = vmax.xlane.f32.xlu0 %v299_v49 }
 0x2a6   :  { %v291_v54 = vpop.f32.mrf.mxu1 }
 0x2a7   :  { %v295_v55 = vmul.f32 0.35355338, %v291_v54  ;;  %v639_v56 = vpop.permute.xlu1 %638 }
 0x2a8   :  { %v640_v57 = vunpack.i.l.bf16 %v639_v56  ;;  %v641_v59 = vunpack.i.h.bf16 %v639_v56 }
 0x2a9   :  { %v297_v58 = vadd.f32 %v295_v55, %v36_v52 }
 0x2aa   :  { %392 = vmatpush.msrb.mxu0 %v640_v57  ;;  %v494_v57 = vld [vmem:[%s1074_s6 + $0x18] sm:$0xff] }
 0x2ab   :  { %v302_v60 = vsel %vm298_vm8, %v297_v58, -inf }
 0x2ac   :  { %303 = vmax.xlane.f32.xlu2 %v302_v60  ;;  %393 = vmatpush.msrb.mxu0 %v641_v59  ;;  %v492_v59 = vld [vmem:[%s1074_s6 + $0x8] sm:$0xff]  ;;  %v491_v60 = vld [vmem:[%s1074_s6] sm:$0xff] }
 0x2b8   :  { %197 = vrot.lane.b32.xlu0 %v852_v53, %s711_s2  ;;  %v47_v53 = vld [vmem:[%s1071_s3 + $0x10] sm:$0xff] }
 0x2b9   :  { %330 = vmatpush.msra.mxu2 %v47_v53  ;;  %v558_v53 = vld [vmem:[%s1075_s7 + $0x78] sm:$0xff] }
 0x2ba   :  { %560 = vmatpush.msra.mxu3 %v558_v53 }
 0x2c4   :  { %193 = vrot.lane.b32.xlu2 %v815_v30, %s711_s2  ;;  %v46_v30 = vld [vmem:[%s1071_s3 + $0x8] sm:$0xff] }
 0x2c5   :  { %331 = vmatpush.msra.mxu2 %v46_v30  ;;  %v557_v30 = vld [vmem:[%s1075_s7 + $0x70] sm:$0xff] }
 0x2c6   :  { %561 = vmatpush.msra.mxu3 %v557_v30 }
 0x2c7   :  { %332 = vmatpush.msra.mxu2 %v45_v1  ;;  %v556_v1 = vld [vmem:[%s1075_s7 + $0x68] sm:$0xff] }
 0x2c8   :  { %562 = vmatpush.msra.mxu3 %v556_v1  ;;  %v659_v1 = vld [vmem:[%s1076_s8 + $0x7] ss:$0 sm:$0xff] }
 0x2c9   :  { %514 = vmatpush.msrb.mxu2 %v494_v57 }
 0x317   :  { %v301_v4 = vpop.xlane.xlu0 %300 }
 0x318   :  { %v305_v5 = vsub.f32 %v296_v48, %v301_v4  ;;  %v555_v4 = vld [vmem:[%s1075_s7 + $0x60] sm:$0xff] }
 0x319   :  { %563 = vmatpush.msra.mxu3 %v555_v4 }
 0x31a   :  { %v307_v6 = vmul.f32 1.442695, %v305_v5 }
 0x31c   :  { %666 = vpow2.f32 %v307_v6 }
 0x31f   :  { %v304_v7 = vpop.xlane.xlu2 %303 }
 0x320   :  { %v306_v9 = vsub.f32 %v297_v58, %v304_v7  ;;  %v493_v58 = vld [vmem:[%s1074_s6 + $0x10] sm:$0xff] }
 0x321   :  { %515 = vmatpush.msrb.mxu2 %v493_v58 }
 0x322   :  { %v667_v11 = vpop.eup %666  ;;  %v309_v12 = vmul.f32 1.442695, %v306_v9 }
 0x323   :  { %617 = vmatmul.msk.f32.vlgmr.msra.gmra.mxu2 %vm298_vm8, %v667_v11 }
 0x324   :  { %668 = vpow2.f32 %v309_v12  ;;  %516 = vmatpush.msrb.mxu2 %v492_v59 }
 0x326   :  { %517 = vmatpush.msrb.mxu2 %v491_v60 }
 0x327   :  { %v194_v13 = vpop.permute.xlu2 %193 }
 0x328   :  { %v217_v15 = vmul.f32 %v194_v13, %v865_v3 }
 0x32a   :  { %v669_v16 = vpop.eup %668  ;;  %v647_v17 = vpack.i.bf16 %v217_v15, %v218_v14  ;;  %v198_v18 = vpop.permute.xlu0 %197  ;;  %v656_v14 = vld [vmem:[%s1076_s8 + $0x4] ss:$0 sm:$0xff] }
 0x32b   :  { %v219_v20 = vmul.f32 %v198_v18, %v865_v3  ;;  %618 = vmatmul.msk.f32.gmra.mxu2 %vm298_vm8, %v669_v16  ;;  %v408_v3 = vld [vmem:[%s1073_s5 + $0x18] sm:$0xff] }
 0x32c   :  { %648 = vrot.lane.b32.xlu1 %v647_v17, %s711_s2 }
 0x32d   :  { %v642_v21 = vpack.i.bf16 %v219_v20, %v220_v19 }
 0x32f   :  { %643 = vrot.lane.b32.xlu0 %v642_v21, %s711_s2  ;;  %s593_s2 = sshll.u32 %s1077_s9, 4  ;;  %s594_s2 = int_to_ptr.hbm [resolvable:$true] %s593_s2 }
 0x39e   :  { %v649_v24 = vpop.permute.xlu1 %648 }
 0x39f   :  { %v650_v27 = vunpack.i.l.bf16 %v649_v24  ;;  %v651_v8 = vunpack.i.h.bf16 %v649_v24 }
 0x3a1   :  { %v644_v22 = vpop.permute.xlu0 %643 }
 0x3a2   :  { %v645_v23 = vunpack.i.l.bf16 %v644_v22  ;;  %v646_v26 = vunpack.i.h.bf16 %v644_v22 }
 0x3a4   :  { %394 = vmatpush.msrb.mxu0 %v645_v23 }
 0x3a6   :  { %v334_v25 = vpop.f32.mrf.mxu2  ;;  %395 = vmatpush.msrb.mxu0 %v646_v26 }
 0x3a7   :  { %670 = vrcp.f32 %v334_v25 }
 0x3a8   :  { %396 = vmatpush.msrb.mxu0 %v650_v27 }
 0x3aa   :  { %397 = vmatpush.msrb.mxu0 %v651_v8 }
 0x3ac   :  { %428 = vmatpush.msra.mxu0 %v408_v3 }
 0x3ad   :  { %v671_v31 = vpop.eup %670 }
 0x3ae   :  { %429 = vmatpush.msra.mxu0 %v407_v28  ;;  %v337_v32 = vpop.f32.mrf.mxu2  ;;  %v342_v33 = vmul.f32 %v671_v31, %v667_v11  ;;  %v553_v31 = vld [vmem:[%s1075_s7 + $0x50] sm:$0xff] }
 0x3af   :  { %672 = vrcp.f32 %v337_v32  ;;  %v552_v32 = vld [vmem:[%s1075_s7 + $0x48] sm:$0xff] }
 0x3b0   :  { %430 = vmatpush.msra.mxu0 %v406_v29  ;;  %v554_v29 = vld [vmem:[%s1075_s7 + $0x58] sm:$0xff] }
 0x3b1   :  { %619 = vmatmul.msk.f32.vlgmr.msrb.gmra.mxu0 %vm298_vm8, %v342_v33  ;;  %564 = vmatpush.msra.mxu3 %v554_v29  ;;  %v551_v33 = vld [vmem:[%s1075_s7 + $0x40] sm:$0xff] }
 0x3b2   :  { %431 = vmatpush.msra.mxu0 %v405_v34  ;;  %v550_v34 = vld [vmem:[%s1075_s7 + $0x38] sm:$0xff] }
 0x3b3   :  { %565 = vmatpush.msra.mxu3 %v553_v31 }
 0x3b5   :  { %v673_v35 = vpop.eup %672  ;;  %566 = vmatpush.msra.mxu3 %v552_v32 }
 0x3b6   :  { %v343_v36 = vmul.f32 %v673_v35, %v669_v16  ;;  %v549_v35 = vld [vmem:[%s1075_s7 + $0x30] sm:$0xff] }
 0x3b7   :  { %567 = vmatpush.msra.mxu3 %v551_v33 }
 0x3b9   :  { %620 = vmatmul.msk.f32.gmra.mxu0 %vm298_vm8, %v343_v36  ;;  %568 = vmatpush.msra.mxu3 %v550_v34  ;;  %v548_v36 = vld [vmem:[%s1075_s7 + $0x28] sm:$0xff] }
 0x3bb   :  { %569 = vmatpush.msra.mxu3 %v549_v35 }
 0x3bd   :  { %570 = vmatpush.msra.mxu3 %v548_v36 }
 0x42e   :  { %v399_v37 = vpop.f32.mrf.mxu0 }
 0x42f   :  { %621 = vmatmul.msk.f32.vlgmr.msra.gmra.mxu0 %vm61_vm0, %v399_v37  ;;  %v547_v37 = vld [vmem:[%s1075_s7 + $0x20] sm:$0xff] }
 0x430   :  { %571 = vmatpush.msra.mxu3 %v547_v37 }
 0x436   :  { %v402_v38 = vpop.f32.mrf.mxu0 }
 0x437   :  { %622 = vmatmul.msk.f32.gmra.mxu0 %vm61_vm0, %v402_v38  ;;  %v546_v38 = vld [vmem:[%s1075_s7 + $0x18] sm:$0xff] }
 0x438   :  { %572 = vmatpush.msra.mxu3 %v546_v38 }
 0x4ac   :  { %v433_v40 = vpop.f32.mrf.mxu0 }
 0x4ad   :  { %v434_v41 = vadd.f32 %v655_v39, %v433_v40  ;;  %v544_v40 = vld [vmem:[%s1075_s7 + $0x8] sm:$0xff] }
 0x4af   :  { %v970_v42 = vadd.f32 %v434_v41, %v768_v0  ;;  %v543_v41 = vld [vmem:[%s1075_s7] sm:$0xff] }
 0x4b1   :  { %v441_v43 = vsel %vm61_vm0, %v970_v42, 0.0 }
 0x4b2   :  { %442 = vadd.xlane.f32.xlu2 %v441_v43  ;;  %v658_v43 = vld [vmem:[%s1076_s8 + $0x6] ss:$0 sm:$0xff] }
 0x4b4   :  { %v436_v44 = vpop.f32.mrf.mxu0 }
 0x4b5   :  { %v437_v45 = vadd.f32 %v655_v39, %v436_v44  ;;  %v545_v39 = vld [vmem:[%s1075_s7 + $0x10] sm:$0xff] }
 0x4b6   :  { %573 = vmatpush.msra.mxu3 %v545_v39 }
 0x4b7   :  { %v975_v46 = vadd.f32 %v437_v45, %v775_v2 }
 0x4b8   :  { %574 = vmatpush.msra.mxu3 %v544_v40 }
 0x4b9   :  { %v444_v47 = vsel %vm61_vm0, %v975_v46, 0.0 }
 0x4ba   :  { %445 = vadd.xlane.f32.xlu0 %v444_v47  ;;  %575 = vmatpush.msra.mxu3 %v543_v41 }
 0x525   :  { %v443_v48 = vpop.xlane.xlu2 %442 }
 0x526   :  { %v447_v49 = vmul.f32 %v443_v48, %v779_v10 }
 0x528   :  { %v449_v50 = vsub.f32 %v970_v42, %v447_v49 }
 0x52a   :  { %v451_v0 = vmul.f32 %v449_v50, %v449_v50  ;;  %v462_v19 = vmul.f32 %v656_v14, %v449_v50 }
 0x52c   :  { %v453_v51 = vsel %vm61_vm0, %v451_v0, 0.0 }
 0x52d   :  { %v446_v52 = vpop.xlane.xlu0 %445  ;;  %454 = vadd.xlane.f32.xlu1 %v453_v51 }
 0x52e   :  { %v448_v54 = vmul.f32 %v446_v52, %v779_v10 }
 0x530   :  { %v450_v55 = vsub.f32 %v975_v46, %v448_v54 }
 0x532   :  { %v452_v2 = vmul.f32 %v450_v55, %v450_v55  ;;  %v463_v27 = vmul.f32 %v656_v14, %v450_v55 }
 0x534   :  { %v456_v56 = vsel %vm61_vm0, %v452_v2, 0.0 }
 0x535   :  { %457 = vadd.xlane.f32.xlu2 %v456_v56 }
 0x5a0   :  { %v455_v61 = vpop.xlane.xlu1 %454 }
 0x5a1   :  { %v459_v62 = vmul.f32 %v455_v61, %v779_v10 }
 0x5a3   :  { %v464_v63 = vadd.f32 1e-06, %v459_v62 }
 0x5a5   :  { %674 = vrsqrt.f32 %v464_v63  ;;  %vm472_vm10 = vweird.f32 %v464_v63 }
 0x5a8   :  { %v458_v5 = vpop.xlane.xlu2 %457 }
 0x5a9   :  { %v460_v6 = vmul.f32 %v458_v5, %v779_v10  ;;  %v657_v10 = vld [vmem:[%s1076_s8 + $0x5] ss:$0 sm:$0xff]  ;;  %s713_s8 = smov 128  }
 0x5ab   :  { %v675_v7 = vpop.eup %674  ;;  %v465_v9 = vadd.f32 1e-06, %v460_v6 }
 0x5ac   :  { %v467_v11 = vmul.f32 %v675_v7, %v464_v63  ;;  %vm473_vm9 = vweird.f32 %v675_v7 }
 0x5ad   :  { %676 = vrsqrt.f32 %v465_v9  ;;  %vm474_vm11 = vmor %vm472_vm10, %vm473_vm9  ;;  %vm482_vm13 = vweird.f32 %v465_v9 }
 0x5ae   :  { %v468_v12 = vmul.f32 %v675_v7, %v467_v11 }
 0x5b0   :  { %v469_v13 = vmul.f32 0.5, %v468_v12 }
 0x5b2   :  { %v470_v15 = vsub.f32 1.5, %v469_v13 }
 0x5b3   :  { %v677_v16 = vpop.eup %676 }
 0x5b4   :  { %v471_v17 = vmul.f32 %v675_v7, %v470_v15  ;;  %v477_v18 = vmul.f32 %v677_v16, %v465_v9  ;;  %vm483_vm12 = vweird.f32 %v677_v16 }
 0x5b5   :  { %vm484_vm14 = vmor %vm482_vm13, %vm483_vm12 }
 0x5b6   :  { %v475_v20 = vsel %vm474_vm11, %v675_v7, %v471_v17  ;;  %v478_v21 = vmul.f32 %v677_v16, %v477_v18 }
 0x5b7   :  { %v486_v22 = vmul.f32 %v475_v20, %v462_v19 }
 0x5b8   :  { %v479_v23 = vmul.f32 0.5, %v478_v21 }
 0x5b9   :  { %v489_v24 = vadd.f32 %v657_v10, %v486_v22 }
 0x5ba   :  { %v480_v26 = vsub.f32 1.5, %v479_v23 }
 0x5bb   :  { %623 = vmatmul.msk.f32.vlgmr.msrb.gmra.mxu2 %vm61_vm0, %v489_v24 }
 0x5bc   :  { %v481_v25 = vmul.f32 %v677_v16, %v480_v26 }
 0x5be   :  { %v485_v8 = vsel %vm484_vm14, %v677_v16, %v481_v25 }
 0x5bf   :  { %v487_v3 = vmul.f32 %v485_v8, %v463_v27 }
 0x5c1   :  { %v490_v28 = vadd.f32 %v657_v10, %v487_v3 }
 0x5c3   :  { %624 = vmatmul.msk.f32.gmra.mxu2 %vm61_vm0, %v490_v28 }
 0x63e   :  { %v519_v44 = vpop.f32.mrf.mxu2 }
 0x63f   :  { %v520_v45 = vadd.f32 %v658_v43, %v519_v44 }
 0x641   :  { %v527_v47 = vmul.f32 0.044715, %v520_v45  ;;  %v525_v59 = vmul.f32 0.5, %v520_v45 }
 0x643   :  { %v529_v48 = vmul.f32 %v527_v47, %v520_v45 }
 0x645   :  { %v531_v49 = vmul.f32 %v529_v48, %v520_v45 }
 0x646   :  { %v522_v50 = vpop.f32.mrf.mxu2 }
 0x647   :  { %v523_v0 = vadd.f32 %v658_v43, %v522_v50  ;;  %v533_v51 = vadd.f32 %v531_v49, %v520_v45 }
 0x649   :  { %v535_v52 = vmul.f32 0.7978846, %v533_v51  ;;  %v528_v54 = vmul.f32 0.044715, %v523_v0  ;;  %v526_v63 = vmul.f32 0.5, %v523_v0 }
 0x64b   :  { %678 = vtanh.f32 %v535_v52  ;;  %v530_v55 = vmul.f32 %v528_v54, %v523_v0 }
 0x64d   :  { %v532_v2 = vmul.f32 %v530_v55, %v523_v0 }
 0x64f   :  { %v534_v56 = vadd.f32 %v532_v2, %v523_v0 }
 0x651   :  { %v679_v57 = vpop.eup %678  ;;  %v536_v58 = vmul.f32 0.7978846, %v534_v56 }
 0x652   :  { %v539_v60 = vadd.f32 1.0, %v679_v57 }
 0x653   :  { %680 = vtanh.f32 %v536_v58 }
 0x654   :  { %v541_v61 = vmul.f32 %v539_v60, %v525_v59 }
 0x656   :  { %576 = vmatmul.f32.vlgmr.msra.gmra.mxu3 %v541_v61 }
 0x659   :  { %v681_v62 = vpop.eup %680 }
 0x65a   :  { %v540_v53 = vadd.f32 1.0, %v681_v62 }
 0x65c   :  { %v542_v30 = vmul.f32 %v540_v53, %v526_v63 }
 0x65e   :  { %579 = vmatmul.f32.gmra.mxu3 %v542_v30 }
 0x6d9   :  { %v577_v4 = vpop.f32.mrf.mxu3 }
 0x6da   :  { %v578_v5 = vadd.f32 %v659_v1, %v577_v4 }
 0x6dc   :  { %v583_v6 = vadd.f32 %v578_v5, %v970_v42 }
 0x6de   :  { %585 = vst.msk [vmem:[#allocation2] sm:$0xff] %vm61_vm0, %v583_v6 }
 0x6e1   :  { %v580_v7 = vpop.f32.mrf.mxu3 }
 0x6e2   :  { %v581_v9 = vadd.f32 %v659_v1, %v580_v7 }
 0x6e4   :  { %v584_v11 = vadd.f32 %v581_v9, %v975_v46 }
 0x6e6   :  { %586 = vst.msk [vmem:[#allocation2 + $0x8] sm:$0xff] %vm61_vm0, %v584_v11 }
 0x6e7   :  { %599 = dma.vmem_to_hbm [thread:$0]  %s592_s18, 256, %s594_s2, [#allocation3], %s713_s8, %s713_s8, %s714_s21  }
 0x6e8   :  { %706 = dma.done.wait [#allocation3], 256  }
 0x6e9   :  { %707 = vsyncadd [#allocation3], 4294967040 }
 0x6ea   :  { %604 = vsyncpa [#allocation3], 1 }

</bundles_post_ra>
